<compile_context>
chip_gen: v6e
topology: v6e:2x2x1
jax: 0.10.0
libtpu: 0.0.40
codegen_flags: <defaults>
</compile_context>

<pallas_src>
import math
import functools

import jax
import jax.numpy as jnp
from jax import lax
from jax.experimental import pallas as pl
from jax.experimental.pallas import tpu as pltpu


def _round_up(x, m):
    return (x + m - 1) // m * m


def _pad_last(x, dp):
    d = x.shape[-1]
    if d == dp:
        return x
    return jnp.pad(x, [(0, 0)] * (x.ndim - 1) + [(0, dp - d)])


def _sha_kernel(*refs, mode, causal, compute_dtype, approx_recip):
    """One (batch-tile, q-tile) step of SHA.

    Data refs (mode dependent), then:
      w_ref:     (Dp, 3*Dp)  fused [WqT*scale | WkT | WvT]  (resident, cdt)
      b_ref:     (1, 3*Dp)   fused [bq*scale  | bk  | bv ]  (fp32)
      kvlen_ref: (Bt, 1, 1)  int32 valid key positions per batch row
      o_ref:     (Bt, Lq_blk, Dp)
    """
    w_ref, b_ref, kvlen_ref, o_ref = refs[-4:]
    data_refs = refs[:-4]
    Dp = w_ref.shape[0]
    cdt = compute_dtype

    if mode == "self_fused":
        (x_ref,) = data_refs
        Bt, L, _ = x_ref.shape
        Lq = Lk = L
        # Single (Bt*L, Dp) x (Dp, 3*Dp) MXU matmul for all three projections.
        x2 = x_ref[...].reshape(Bt * L, Dp).astype(cdt)
        proj = jnp.dot(x2, w_ref[...], preferred_element_type=jnp.float32) + b_ref[...]
        qp = proj[:, 0 * Dp:1 * Dp].reshape(Bt, Lq, Dp)
        kp = proj[:, 1 * Dp:2 * Dp].reshape(Bt, Lk, Dp)
        vp = proj[:, 2 * Dp:3 * Dp].reshape(Bt, Lk, Dp)
    elif mode == "cross":
        q_ref, kv_ref = data_refs
        Bt, Lq, _ = q_ref.shape
        Lk = kv_ref.shape[1]
        q2 = q_ref[...].reshape(Bt * Lq, Dp).astype(cdt)
        kv2 = kv_ref[...].reshape(Bt * Lk, Dp).astype(cdt)
        qp = (jnp.dot(q2, w_ref[:, :Dp], preferred_element_type=jnp.float32)
              + b_ref[:, :Dp]).reshape(Bt, Lq, Dp)
        # K and V projections fused into one (Bt*Lk, Dp) x (Dp, 2*Dp) matmul.
        kvp = (jnp.dot(kv2, w_ref[:, Dp:], preferred_element_type=jnp.float32)
               + b_ref[:, Dp:])
        kp = kvp[:, :Dp].reshape(Bt, Lk, Dp)
        vp = kvp[:, Dp:].reshape(Bt, Lk, Dp)
    else:  # "general": three distinct Q/K/V tensors.
        q_ref, k_ref, v_ref = data_refs
        Bt, Lq, _ = q_ref.shape
        Lk = k_ref.shape[1]
        q2 = q_ref[...].reshape(Bt * Lq, Dp).astype(cdt)
        k2 = k_ref[...].reshape(Bt * Lk, Dp).astype(cdt)
        v2 = v_ref[...].reshape(Bt * Lk, Dp).astype(cdt)
        qp = (jnp.dot(q2, w_ref[:, 0 * Dp:1 * Dp], preferred_element_type=jnp.float32)
              + b_ref[:, 0 * Dp:1 * Dp]).reshape(Bt, Lq, Dp)
        kp = (jnp.dot(k2, w_ref[:, 1 * Dp:2 * Dp], preferred_element_type=jnp.float32)
              + b_ref[:, 1 * Dp:2 * Dp]).reshape(Bt, Lk, Dp)
        vp = (jnp.dot(v2, w_ref[:, 2 * Dp:3 * Dp], preferred_element_type=jnp.float32)
              + b_ref[:, 2 * Dp:3 * Dp]).reshape(Bt, Lk, Dp)

    # Scores: contract last dims directly ('bqd,bkd->bqk') -- no kp.T is
    # materialized.  1/sqrt(dk) is already folded into Wq / bq.
    s = jnp.einsum('bqd,bkd->bqk', qp.astype(cdt), kp.astype(cdt),
                   preferred_element_type=jnp.float32)

    # Single fused mask: key position is valid iff col < min(row+1, kv_len)
    # (or col < kv_len when not causal).  One full-size compare + one select.
    # -1e30 (finite) => a fully-masked row gives uniform attention, not NaN.
    neg = jnp.float32(-1e30)
    kv_len = kvlen_ref[...]                                       # (Bt,1,1)
    col = lax.broadcasted_iota(jnp.int32, (1, 1, Lk), 2)          # (1,1,Lk)
    if causal:
        q_off = pl.program_id(1) * Lq
        row = lax.broadcasted_iota(jnp.int32, (1, Lq, 1), 1) + q_off
        limit = jnp.minimum(row + 1, kv_len)                      # (Bt,Lq,1)
    else:
        limit = kv_len
    s = jnp.where(col < limit, s, neg)

    # Numerically stable softmax in fp32; reciprocal runs on the EUP slot.
    m = jnp.max(s, axis=-1, keepdims=True)
    e = jnp.exp(s - m)
    denom = jnp.sum(e, axis=-1, keepdims=True)
    attn = (e * pl.reciprocal(denom, approx=approx_recip)).astype(cdt)

    out = jnp.einsum('bqk,bkd->bqd', attn, vp.astype(cdt),
                     preferred_element_type=jnp.float32)
    o_ref[...] = out.astype(o_ref.dtype)


def _step_vmem_bytes(bb, lq_blk, lk, dp, in_item, out_item, n_data_inputs):
    """Rough per-grid-step VMEM working-set estimate (double-buffered I/O)."""
    in_tiles = bb * lq_blk * dp * in_item
    if n_data_inputs >= 2:
        in_tiles += bb * lk * dp * in_item * (n_data_inputs - 1)
    out_tile = bb * lq_blk * dp * out_item
    w_bytes = dp * 3 * dp * 4 + 3 * dp * 4
    proj = bb * (lq_blk + 2 * lk) * dp * 4           # fp32 projections
    scores = 3 * bb * lq_blk * lk * 4                # s / exp / attn fp32
    return 2 * (in_tiles + out_tile) + w_bytes + proj + scores


def _pick_block_lq(lq, target=512):
    if lq <= target:
        return lq
    for cand in range(target, 7, -8):                # multiples of 8
        if lq % cand == 0:
            return cand
    return lq


def sha_forward(Q, K, V, params, dk, *, causal=False, kv_valid_lens=None,
                use_bf16_matmuls=False, block_b=None, block_lq=None,
                approx_reciprocal=False):
    """Pallas SHA forward.

    Q: (B, Lq, D), K/V: (B, Lk, D).
    params: wq/wk/wv (D, D) torch-style (out, in) and bq/bk/bv (D,).
    causal: apply the upper-triangular self-attention mask in-kernel.
    kv_valid_lens: optional (B,) int32 -- key positions >= len are masked
                   (trailing-padding mask, replaces the (B,Lq,Lk) bool mask).
    use_bf16_matmuls: cast MXU operands to bf16 (recommended on v5e/v6e/v7x);
                      fp32 accumulation and fp32 softmax math are kept.
    """
    B, Lq, D = Q.shape
    Lk = K.shape[1]
    assert K.shape == (B, Lk, D) and V.shape == (B, Lk, D)

    cdt = jnp.bfloat16 if (use_bf16_matmuls or Q.dtype == jnp.bfloat16) else jnp.float32

    # Lane-dense feature dimension: pad D up to a multiple of 128.
    Dp = _round_up(D, 128)

    # Fuse WqT|WkT|WvT into a single (Dp, 3*Dp) weight and fold 1/sqrt(dk)
    # into the Q projection (nn.Linear: y = x @ W^T + b).  Zero padding keeps
    # the extra feature lanes exactly zero.
    scale = 1.0 / math.sqrt(dk)

    def _pad_w(wT):
        return jnp.pad(wT, ((0, Dp - D), (0, Dp - D)))

    def _pad_b(b):
        return jnp.pad(b, (0, Dp - D))

    w_fused = jnp.concatenate(
        [_pad_w(params["wq"].T * scale), _pad_w(params["wk"].T), _pad_w(params["wv"].T)],
        axis=1).astype(cdt)                                         # (Dp, 3Dp)
    b_fused = jnp.concatenate(
        [_pad_b(params["bq"] * scale), _pad_b(params["bk"]), _pad_b(params["bv"])]
    ).reshape(1, 3 * Dp).astype(jnp.float32)                        # (1, 3Dp)

    if kv_valid_lens is None:
        kv_valid_lens = jnp.full((B,), Lk, dtype=jnp.int32)
    kv_lens = kv_valid_lens.astype(jnp.int32).reshape(B, 1, 1)

    # Pad inputs once in the wrapper (cheap XLA op) -> no in-kernel relayout.
    Qp = _pad_last(Q, Dp)
    Kp = Qp if (K is Q) else _pad_last(K, Dp)
    Vp = Kp if (V is K) else (Qp if (V is Q) else _pad_last(V, Dp))

    if block_lq is None:
        block_lq = _pick_block_lq(Lq)
    assert Lq % block_lq == 0, "block_lq must divide Lq"
    num_q_tiles = Lq // block_lq

    try:
        vmem_cap = int(pltpu.get_tpu_info().vmem_capacity_bytes)
    except Exception:
        vmem_cap = 64 * 1024 * 1024        # conservative (covers v7x)

    if (Qp is Kp) and (Kp is Vp) and num_q_tiles == 1:
        mode, data = "self_fused", (Qp,)
    elif Kp is Vp:
        mode, data = "cross", (Qp, Kp)
    else:
        mode, data = "general", (Qp, Kp, Vp)
    n_data = len(data)

    in_item = Qp.dtype.itemsize
    out_item = Q.dtype.itemsize

    if block_b is None:
        budget = int(0.55 * vmem_cap)
        divs = [d for d in range(B, 0, -1) if B % d == 0]
        if num_q_tiles == 1 and B > 1:
            # Leave >=2 grid steps so both v7x TensorCores get work.
            divs = [d for d in divs if d <= B // 2] or [1]
        block_b = divs[-1]
        for d in divs:
            if _step_vmem_bytes(d, block_lq, Lk, Dp, in_item, out_item, n_data) <= budget:
                block_b = d
                break
    assert B % block_b == 0, "block_b must divide B"

    grid = (B // block_b, num_q_tiles)

    est = _step_vmem_bytes(block_b, block_lq, Lk, Dp, in_item, out_item, n_data)
    vmem_limit = int(min(0.9 * vmem_cap, max(2 * est, 32 * 1024 * 1024)))

    q_spec = pl.BlockSpec((block_b, block_lq, Dp), lambda b, q: (b, q, 0))
    kv_spec = pl.BlockSpec((block_b, Lk, Dp), lambda b, q: (b, 0, 0))
    w_spec = pl.BlockSpec((Dp, 3 * Dp), lambda b, q: (0, 0))       # resident
    bias_spec = pl.BlockSpec((1, 3 * Dp), lambda b, q: (0, 0))     # resident
    kvlen_spec = pl.BlockSpec((block_b, 1, 1), lambda b, q: (b, 0, 0))
    out_spec = pl.BlockSpec((block_b, block_lq, Dp), lambda b, q: (b, q, 0))

    in_specs = [q_spec] + [kv_spec] * (n_data - 1) + [w_spec, bias_spec, kvlen_spec]

    # Advisory cost estimate so XLA schedules around the custom call.
    flops = 2 * B * (Lq + 2 * Lk) * Dp * Dp + 4 * B * Lq * Lk * Dp
    bytes_accessed = ((B * Lq * Dp + 2 * B * Lk * Dp) * in_item
                      + B * Lq * Dp * out_item
                      + w_fused.size * w_fused.dtype.itemsize)
    cost = pl.CostEstimate(flops=int(flops), transcendentals=int(B * Lq * Lk),
                           bytes_accessed=int(bytes_accessed))

    kernel = functools.partial(_sha_kernel, mode=mode, causal=causal,
                               compute_dtype=cdt, approx_recip=approx_reciprocal)

    out_padded = pl.pallas_call(
        kernel,
        out_shape=jax.ShapeDtypeStruct((B, Lq, Dp), Q.dtype),
        grid=grid,
        in_specs=in_specs,
        out_specs=out_spec,
        compiler_params=pltpu.CompilerParams(
            dimension_semantics=("parallel", "parallel"),
            vmem_limit_bytes=vmem_limit),
        cost_estimate=cost,
    )(*data, w_fused, b_fused, kv_lens)

    return out_padded[..., :D]


def sha_reference(Q, K, V, params, dk, *, causal=False, kv_valid_lens=None):
    """Pure-JAX reference (mirrors the PyTorch SHA forward)."""
    qp = Q @ params["wq"].T + params["bq"]
    kp = K @ params["wk"].T + params["bk"]
    vp = V @ params["wv"].T + params["bv"]
    s = jnp.einsum('bqd,bkd->bqk', qp, kp) / math.sqrt(dk)
    Lq, Lk = Q.shape[1], K.shape[1]
    if causal:
        cm = jnp.triu(jnp.ones((Lq, Lk), dtype=bool), k=1)
        s = jnp.where(cm[None], -jnp.inf, s)
    if kv_valid_lens is not None:
        pad = jnp.arange(Lk)[None, None, :] >= kv_valid_lens[:, None, None]
        s = jnp.where(pad, -jnp.inf, s)
    a = jax.nn.softmax(s, axis=-1)
    return jnp.einsum('bqk,bkd->bqd', a, vp)


if __name__ == "__main__":
    # cfg: dmodel=32, h=4 -> dk=8
    B, L, D, H = 2, 8, 32, 4
    Lm = 16
    dk = D // H

    key = jax.random.PRNGKey(0)
    keys = jax.random.split(key, 11)

    X = jax.random.normal(keys[0], (B, L, D), dtype=jnp.float32)      # self-attn input
    mem = jax.random.normal(keys[1], (B, Lm, D), dtype=jnp.float32)   # encoder memory
    Qx = jax.random.normal(keys[2], (B, L, D), dtype=jnp.float32)
    Kx = jax.random.normal(keys[3], (B, L, D), dtype=jnp.float32)
    Vx = jax.random.normal(keys[4], (B, L, D), dtype=jnp.float32)

    bound = 1.0 / math.sqrt(D)  # nn.Linear default init range
    params = {
        "wq": jax.random.uniform(keys[5], (D, D), jnp.float32, -bound, bound),
        "wk": jax.random.uniform(keys[6], (D, D), jnp.float32, -bound, bound),
        "wv": jax.random.uniform(keys[7], (D, D), jnp.float32, -bound, bound),
        "bq": jax.random.uniform(keys[8], (D,), jnp.float32, -bound, bound),
        "bk": jax.random.uniform(keys[9], (D,), jnp.float32, -bound, bound),
        "bv": jax.random.uniform(keys[10], (D,), jnp.float32, -bound, bound),
    }

    # 1) Decoder-style causal self-attention (Q=K=V) + trailing padding.
    self_lens = jnp.array([L, 6], dtype=jnp.int32)
    out1 = jax.block_until_ready(
        sha_forward(X, X, X, params, dk, causal=True, kv_valid_lens=self_lens))
    ref1 = sha_reference(X, X, X, params, dk, causal=True, kv_valid_lens=self_lens)
    assert out1.shape == (B, L, D) and out1.dtype == X.dtype
    assert bool(jnp.allclose(out1, ref1, atol=2e-3, rtol=2e-3)), "self-attn mismatch"

    # 2) Encoder-decoder cross-attention (K=V=memory), padding mask only.
    mem_lens = jnp.array([Lm, 10], dtype=jnp.int32)
    out2 = jax.block_until_ready(
        sha_forward(X, mem, mem, params, dk, causal=False, kv_valid_lens=mem_lens))
    ref2 = sha_reference(X, mem, mem, params, dk, causal=False, kv_valid_lens=mem_lens)
    assert bool(jnp.allclose(out2, ref2, atol=2e-3, rtol=2e-3)), "cross-attn mismatch"

    # 3) Fully general (distinct Q/K/V), no masks.
    out3 = jax.block_until_ready(sha_forward(Qx, Kx, Vx, params, dk))
    ref3 = sha_reference(Qx, Kx, Vx, params, dk)
    assert bool(jnp.allclose(out3, ref3, atol=2e-3, rtol=2e-3)), "general mismatch"

    # 4) bf16 MXU-operand path (recommended on v5e/v6e/v7x), fp32 softmax.
    out4 = jax.block_until_ready(
        sha_forward(X, X, X, params, dk, causal=True, kv_valid_lens=self_lens,
                    use_bf16_matmuls=True))
    assert bool(jnp.allclose(out4, ref1, atol=3e-2, rtol=3e-2)), "bf16 path mismatch"

    print("KERNEL_OK")
</pallas_src>

<mosaic_0001>
module attributes {stable_mosaic.version = 11 : i64} {
  func.func @_sha_kernel(%arg0: i32, %arg1: i32, %arg2: memref<1x8x128xf32, #tpu.memory_space<vmem>>, %arg3: memref<128x384xf32, #tpu.memory_space<vmem>>, %arg4: memref<1x384xf32, #tpu.memory_space<vmem>>, %arg5: memref<1x1x1xi32, #tpu.memory_space<vmem>>, %arg6: memref<1x8x128xf32, #tpu.memory_space<vmem>>) attributes {dimension_semantics = [#tpu.dimension_semantics<parallel>, #tpu.dimension_semantics<parallel>], iteration_bounds = array<i64: 2, 1>, scalar_prefetch = 0 : i64, scratch_operands = 0 : i64, tpu.core_type = #tpu.core_type<tc>, window_params = [{transform_indices = @transform_0, window_bounds = array<i64: 1, 8, 128>}, {pipeline_mode = #tpu.pipeline_mode<synchronous>, transform_indices = @transform_1, window_bounds = array<i64: 128, 384>}, {pipeline_mode = #tpu.pipeline_mode<synchronous>, transform_indices = @transform_2, window_bounds = array<i64: 1, 384>}, {transform_indices = @transform_3, window_bounds = array<i64: 1, 1, 1>}, {transform_indices = @transform_4, window_bounds = array<i64: 1, 8, 128>}]} {
    %c0 = arith.constant 0 : index
    %c0_0 = arith.constant 0 : index
    %c0_1 = arith.constant 0 : index
    %0 = vector.load %arg2[%c0, %c0_0, %c0_1] : memref<1x8x128xf32, #tpu.memory_space<vmem>>, vector<1x8x128xf32>
    %1 = vector.shape_cast %0 : vector<1x8x128xf32> to vector<8x128xf32>
    %c0_2 = arith.constant 0 : index
    %c0_3 = arith.constant 0 : index
    %2 = vector.load %arg3[%c0_2, %c0_3] : memref<128x384xf32, #tpu.memory_space<vmem>>, vector<128x384xf32>
    %cst = arith.constant dense<0.000000e+00> : vector<8x384xf32>
    %3 = tpu.matmul %1, %2, %cst {dimension_numbers = #tpu.dot_dimension_numbers<[1], [0], [0], [1], [0, 0, 1, 1], [], []>} : vector<8x128xf32>, vector<128x384xf32>, vector<8x384xf32> -> vector<8x384xf32>
    %c0_4 = arith.constant 0 : index
    %c0_5 = arith.constant 0 : index
    %4 = vector.load %arg4[%c0_4, %c0_5] : memref<1x384xf32, #tpu.memory_space<vmem>>, vector<1x384xf32>
    %5 = vector.broadcast %4 : vector<1x384xf32> to vector<8x384xf32>
    %6 = arith.addf %3, %5 : vector<8x384xf32>
    %7 = vector.extract_strided_slice %6 {offsets = [0, 0], sizes = [8, 128], strides = [1, 1]} : vector<8x384xf32> to vector<8x128xf32>
    %8 = vector.shape_cast %7 : vector<8x128xf32> to vector<1x8x128xf32>
    %9 = vector.extract_strided_slice %6 {offsets = [0, 128], sizes = [8, 128], strides = [1, 1]} : vector<8x384xf32> to vector<8x128xf32>
    %10 = vector.shape_cast %9 : vector<8x128xf32> to vector<1x8x128xf32>
    %11 = vector.extract_strided_slice %6 {offsets = [0, 256], sizes = [8, 128], strides = [1, 1]} : vector<8x384xf32> to vector<8x128xf32>
    %12 = vector.shape_cast %11 : vector<8x128xf32> to vector<1x8x128xf32>
    "tpu.trace_start"() <{level = 10 : i32, message = "bqd,bkd->bqk"}> : () -> ()
    %cst_6 = arith.constant dense<0.000000e+00> : vector<1x8x8xf32>
    %13 = tpu.matmul %8, %10, %cst_6 {dimension_numbers = #tpu.dot_dimension_numbers<[2], [2], [1], [1], [0, 0, 0, 1, 1, 1], [0], [0]>} : vector<1x8x128xf32>, vector<1x8x128xf32>, vector<1x8x8xf32> -> vector<1x8x8xf32>
    "tpu.trace_stop"() : () -> ()
    %c0_7 = arith.constant 0 : index
    %c0_8 = arith.constant 0 : index
    %c0_9 = arith.constant 0 : index
    %14 = vector.load %arg5[%c0_7, %c0_8, %c0_9] : memref<1x1x1xi32, #tpu.memory_space<vmem>>, vector<1x1x1xi32>
    %15 = tpu.iota {dimensions = array<i32: 2>} : vector<1x1x8xi32>
    %c8_i32 = arith.constant 8 : i32
    %16 = arith.muli %arg1, %c8_i32 : i32
    %17 = tpu.iota {dimensions = array<i32: 1>} : vector<1x8x1xi32>
    %18 = vector.broadcast %16 : i32 to vector<1x8x1xi32>
    %19 = arith.addi %17, %18 : vector<1x8x1xi32>
    %c1_i32 = arith.constant 1 : i32
    %20 = vector.broadcast %c1_i32 : i32 to vector<1x8x1xi32>
    %21 = arith.addi %19, %20 : vector<1x8x1xi32>
    %22 = vector.broadcast %14 : vector<1x1x1xi32> to vector<1x8x1xi32>
    %23 = arith.minsi %21, %22 : vector<1x8x1xi32>
    %24 = vector.broadcast %15 : vector<1x1x8xi32> to vector<1x8x8xi32>
    %25 = vector.broadcast %23 : vector<1x8x1xi32> to vector<1x8x8xi32>
    %26 = arith.cmpi slt, %24, %25 : vector<1x8x8xi32>
    %cst_10 = arith.constant -1.000000e+30 : f32
    %27 = vector.broadcast %cst_10 : f32 to vector<1x8x8xf32>
    %28 = arith.select %26, %13, %27 : vector<1x8x8xi1>, vector<1x8x8xf32>
    %cst_11 = arith.constant dense<0xFF800000> : vector<1x8xf32>
    %29 = vector.multi_reduction <maximumf>, %28, %cst_11 [2] : vector<1x8x8xf32> to vector<1x8xf32>
    %30 = vector.shape_cast %29 : vector<1x8xf32> to vector<1x8x1xf32>
    %31 = vector.broadcast %30 : vector<1x8x1xf32> to vector<1x8x8xf32>
    %32 = arith.subf %28, %31 : vector<1x8x8xf32>
    %33 = math.exp %32 : vector<1x8x8xf32>
    %cst_12 = arith.constant dense<0.000000e+00> : vector<1x8xf32>
    %34 = vector.multi_reduction <add>, %33, %cst_12 [2] : vector<1x8x8xf32> to vector<1x8xf32>
    %35 = vector.shape_cast %34 : vector<1x8xf32> to vector<1x8x1xf32>
    %36 = tpu.reciprocal %35 : vector<1x8x1xf32> -> vector<1x8x1xf32>
    %37 = vector.broadcast %36 : vector<1x8x1xf32> to vector<1x8x8xf32>
    %38 = arith.mulf %33, %37 : vector<1x8x8xf32>
    "tpu.trace_start"() <{level = 10 : i32, message = "bqk,bkd->bqd"}> : () -> ()
    %cst_13 = arith.constant dense<0.000000e+00> : vector<1x8x128xf32>
    %39 = tpu.matmul %38, %12, %cst_13 {dimension_numbers = #tpu.dot_dimension_numbers<[2], [1], [1], [2], [0, 0, 0, 1, 1, 2], [0], [0]>} : vector<1x8x8xf32>, vector<1x8x128xf32>, vector<1x8x128xf32> -> vector<1x8x128xf32>
    "tpu.trace_stop"() : () -> ()
    %c0_14 = arith.constant 0 : index
    %c0_15 = arith.constant 0 : index
    %c0_16 = arith.constant 0 : index
    %40 = vector.load %arg6[%c0_14, %c0_15, %c0_16] : memref<1x8x128xf32, #tpu.memory_space<vmem>>, vector<1x8x128xf32>
    tpu.vector_store %arg6[%c0_14, %c0_15, %c0_16], %39 {strides = array<i32>} : memref<1x8x128xf32, #tpu.memory_space<vmem>>, vector<1x8x128xf32>,
    return
  }
  func.func @transform_0(%arg0: i32, %arg1: i32) -> (i32, i32, i32) {
    %c0_i32 = arith.constant 0 : i32
    %c0_i32_0 = arith.constant 0 : i32
    return %arg0, %arg1, %c0_i32 : i32, i32, i32
  }
  func.func @transform_1(%arg0: i32, %arg1: i32) -> (i32, i32) {
    %c0_i32 = arith.constant 0 : i32
    %c0_i32_0 = arith.constant 0 : i32
    %c0_i32_1 = arith.constant 0 : i32
    return %c0_i32, %c0_i32_0 : i32, i32
  }
  func.func @transform_2(%arg0: i32, %arg1: i32) -> (i32, i32) {
    %c0_i32 = arith.constant 0 : i32
    %c0_i32_0 = arith.constant 0 : i32
    %c0_i32_1 = arith.constant 0 : i32
    return %c0_i32, %c0_i32_0 : i32, i32
  }
  func.func @transform_3(%arg0: i32, %arg1: i32) -> (i32, i32, i32) {
    %c0_i32 = arith.constant 0 : i32
    %c0_i32_0 = arith.constant 0 : i32
    %c0_i32_1 = arith.constant 0 : i32
    return %arg0, %c0_i32, %c0_i32_0 : i32, i32, i32
  }
  func.func @transform_4(%arg0: i32, %arg1: i32) -> (i32, i32, i32) {
    %c0_i32 = arith.constant 0 : i32
    %c0_i32_0 = arith.constant 0 : i32
    return %arg0, %arg1, %c0_i32 : i32, i32, i32
  }
}

</mosaic_0001>

<bundles_post_ra>
// kernel: tpu_custom_call.1
= control target key start
LH: loop header
LB: loop body
LE: loop exit
PB: predicated region body
PF: predicated region fallthrough
CT: control target
= control target key end

     0   :  { %s1334_s0 = inlined_call_operand.hbm [shape: f32[2,8,128], index: 0, kind: input, shape index: {}]   ;;  %s1335_s1 = inlined_call_operand.hbm [shape: f32[128,384], index: 1, kind: input, shape index: {}]   ;;  %s1336_s2 = inlined_call_operand.vmem [shape: f32[1,384], index: 2, kind: input, shape index: {}]   ;;  %s1337_s3 = inlined_call_operand.vmem [shape: s32[2,1,1], index: 3, kind: input, shape index: {}]   ;;  %s1338_s4 = inlined_call_operand.hbm [shape: f32[2,8,128], index: 4, kind: output, shape index: {}]  }
   0x1   :  { %1340 = sst [smem:[#allocation11_spill]] %s1335_s1 }
   0x2   :  { %9 = vsyncpa [#allocation3], 0 }
   0x3   :  { %11 = vsyncpa [#allocation3 + $0x1], 0 }
   0x4   :  { %12 = vsyncpa [#allocation6], 0 }
   0x5   :  { %13 = vsyncpa [#allocation4], 0 }
   0x6   :  { %15 = vsyncpa [#allocation4 + $0x1], 0  ;;  %s1095_s15 = smov 0   ;;  %s1097_s16 = smov 0  }
   0x7   :  { %s1099_s17 = smov 0   ;;  %s1101_s18 = smov 0  }
   0x8   :  { %s1103_s19 = smov 0   ;;  %s1105_s20 = smov 0  }
   0x9 LB: > { %s756_s21 = sadd.s32 4294967295, %s1060_s20   ;;  %s757_s22 = sadd.s32 4294967294, %s1060_s20   ;;  %s1060_s20 = sphi %s1105_s20, %s21_s20   ;;  %s1056_s19 = sphi %s1103_s19, %s1358_s19   ;;  %s1052_s18 = sphi %s1101_s18, %s1357_s18   ;;  %s1048_s17 = sphi %s1099_s17, %s1356_s17   ;;  %s1044_s16 = sphi %s1097_s16, %s1355_s16   ;;  %s1040_s15 = sphi %s1095_s15, %s1354_s15  }
   0xa   : > { %p55_p0 = scmp.ne.s32.totalorder %s1044_s16, %s1040_s15  ;;  %p1129_p1 = scmp.eq.s32.totalorder %s756_s21, 0 }
   0xb   : > { %p1133_p2 = scmp.eq.s32.totalorder %s756_s21, 1  ;;  %p155_p3 = scmp.eq.s32.totalorder %s757_s22, 1 }
   0xc   : > { %p1139_p4 = por %p1129_p1, %p55_p0  ;;  %p758_p5 = scmp.ge.s32.totalorder %s1060_s20, 1 }
   0xd   : > { %p1144_p6 = por %p155_p3, %p55_p0  ;;  %p162_p7 = scmp.lt.s32.totalorder %s1060_s20, 3 }
   0xe   : > { %s1343_s25 = scalar_select %p1139_p4, 1, 0 }
   0xf   : > { %s1344_s26 = scalar_select %p1144_p6, 1, 0 }
  0x10   : > { %p1149_p8 = pnand %p758_p5, %p162_p7  ;;  %s1062_s28 = smov [#allocation5]  }
  0x11   : > { %s174_s29 = sshll.u32 %s1062_s28, 4  ;;  %s33_s5 = sadd.s32 1, %s1056_s19  ;;  %s175_s29 = int_to_ptr.vmem [resolvable:$true] %s174_s29 }
  0x12   : > { %p847_p9 = pneg %p1149_p8  ;;  %s933_s6 = scalar_lea.vmem %s175_s29, 6144 }
  0x13   : > { %p934_p13 = scmp.ne.s32.totalorder %s175_s29, %s933_s6  ;;  %p941_p5 = scmp.lt.s32.totalorder %s175_s29, %s175_s29 }
  0x14   : > { %p1158_p11 = pnand %p847_p9, %p1129_p1  ;;  %p942_p7 = scmp.lt.s32.totalorder %s933_s6, %s933_s6 }
  0x16   : > { %p924_p12 = pneg %p1158_p11  ;;  %p943_p6 = por %p942_p7, %p941_p5 }
  0x18   : > { %p936_p0 = pnand %p934_p13, %p924_p12 }
  0x1a   : > { %p937_p3 = pneg %p936_p0 }
  0x1c   : > { %p944_p4 = pnand %p943_p6, %p937_p3 }
  0x1e   : > { %947 = shalt.err (!%p944_p4)
}
  0x1f   : > { %s1063_s7 = smov 384   ;;  %s1064_s8 = smov 24  }
  0x20   : > { %s1347_s1 = sld [smem:[#allocation11_spill]]  ;;  %p35_p6 = scmp.ge.s32.totalorder %s33_s5, 2 }
  0x21   : > { %s42_s11 = sadd.s32 1, %s1048_s17  ;;  %p49_p4 = scmp.ne.s32.totalorder %s1048_s17, %s1044_s16 }
  0x22   : > { %p50_p9 = scmp.eq.s32.totalorder %s1060_s20, 0  ;;  %s1360_s5 = smov (%p35_p6, %s33_s5), 0 }
  0x23   : > { %p1182_p13 = por %p1133_p2, %p49_p4  ;;  %s37_s14 = ssub.s32 %s1056_s19, %s1360_s5 }
  0x24   : > { %p1176_p12 = por %p50_p9, %p49_p4  ;;  %p860_p0 = scmp.lt.s32.totalorder %s1060_s20, 2 }
  0x25   : > { %s191_s21 = sand.u32 1, %s1048_s17  }
  0x26   : > { %850 = dma.hbm_to_vmem [thread:$0]  (!%p1158_p11), %s1347_s1, 6144, %s175_s29, [#allocation6], %s1063_s7, %s1063_s7, %s1064_s8  }
  0x27   : > { %p40_p11 = scmp.eq.s32.totalorder %s37_s14, 0  ;;  %s761_s22 = sshll.u32 %s191_s21, 3 }
  0x28   : > { %s762_s29 = sshll.u32 %s1056_s19, 7  ;;  %s195_s8 = scalar_lea.vmem [#allocation2], %s761_s22 }
  0x29   : > { %s1191_s28 = scalar_select %p40_p11, %s1048_s17, %s42_s11  }
  0x2a   : > { %s201_s7 = scalar_lea.hbm %s1334_s0, %s762_s29  ;;  %s203_s9 = sshll.u32 %s195_s8, 4  ;;  %s204_s9 = int_to_ptr.vmem [resolvable:$true] %s203_s9 }
  0x2b   : > { %p1199_p2 = pnand %p860_p0, %p1176_p12  ;;  %s192_s10 = scalar_lea.sflag [#allocation3], %s191_s21 }
  0x2c   : > { %s961_s14 = scalar_lea.vmem %s204_s9, 128  ;;  %s1065_s11 = smov [#allocation2]  }
  0x2d   : > { %p950_p3 = pneg %p1199_p2  ;;  %p962_p5 = scmp.ne.s32.totalorder %s204_s9, %s961_s14 }
  0x2e   : > { %s966_s1 = sshll.u32 %s1065_s11, 4  ;;  %s967_s1 = int_to_ptr.vmem [resolvable:$false] %s966_s1 }
  0x2f   : > { %p964_p7 = pnand %p962_p5, %p950_p3  ;;  %s968_s29 = scalar_lea.vmem %s967_s1, 256 }
  0x30   : > { %p969_p4 = scmp.lt.s32.totalorder %s204_s9, %s967_s1  ;;  %p970_p9 = scmp.lt.s32.totalorder %s968_s29, %s961_s14 }
  0x31   : > { %p965_p6 = pneg %p964_p7 }
  0x32   : > { %p971_p11 = por %p970_p9, %p969_p4 }
  0x34   : > { %p972_p10 = pnand %p971_p11, %p965_p6 }
  0x36   : > { %975 = shalt.err (!%p972_p10)
}
  0x37   : > { %854 = dma.hbm_to_vmem [thread:$0]  (!%p1199_p2), %s201_s7, 128, %s204_s9, %s192_s10  }
  0x38   : > { %218 = sbr.rel (%p1149_p8) target bundleno = 1011 (0x3f3), region = 36  ;;  %s1210_s12 = sand.u32 (!%p1149_p8), 1, %s1044_s16  }
  0x39   : > { %s764_s21 = sshll.u32 (!%p1149_p8), %s1210_s12, 3  ;;  %s221_s22 = scalar_lea.sflag (!%p1149_p8), [#allocation3], %s1210_s12 }
  0x3a   : > { %s1216_s1 = scalar_lea.vmem (!%p1149_p8), [#allocation2], %s764_s21  ;;  %p1351_p12 = scmp.ne.s32.totalorder (!%p1149_p8), %s1343_s25, 0 }
  0x3d   : > { %1027 = dma.done.wait (%p1351_p12), %s221_s22, 128  }
  0x3e   : > { %1029 = vsyncadd (%p1351_p12), %s221_s22, 4294967168 }
  0x3f   : > { %1031 = dma.done.wait (%p1129_p1), [#allocation6], 6144  }
  0x40   : > { %1033 = vsyncadd (%p1129_p1), [#allocation6], 4294961152  ;;  %v1066_v0 = vmov 0.0   ;;  %v306_v1 = vld [vmem:[#allocation5 + $0x170] sm:$0xff]  ;;  %v305_v2 = vld [vmem:[#allocation5 + $0x168] sm:$0xff]  ;;  %v310_v34 = vlaneseq  ;;  %vm1067_vm0 = vmmov 0  }
  0x41   : > { %389 = vmatprep.mubr.f32.mxu0 %v1066_v0  ;;  %794 = vmatprep.subr.mxu1 %v1066_v0  ;;  %v303_v3 = vld [vmem:[#allocation5 + $0x158] sm:$0xff]  ;;  %v302_v4 = vld [vmem:[#allocation5 + $0x150] sm:$0xff]  ;;  %v300_v5 = vld [vmem:[#allocation5 + $0x140] sm:$0xff]  ;;  %p256_p1 = scmp.lt.s32.totalorder %s1052_s18, 1  ;;  %v1068_v36 = vmov 0   ;;  %vm556_vm3 = vcmask 64512  }
  0x42   : > { %325 = vmatprep.subr.mxu0 %v306_v1  ;;  %v299_v6 = vld [vmem:[#allocation5 + $0x138] sm:$0xff]  ;;  %v297_v7 = vld [vmem:[#allocation5 + $0x128] sm:$0xff]  ;;  %v296_v8 = vld [vmem:[#allocation5 + $0x120] sm:$0xff]  ;;  %826 = vmatprep.mubr.msk.f32.mxu1 %vm1067_vm0, %v1066_v0  ;;  %v1238_v35 = vshrl.u32 %v310_v34, 7  ;;  %s255_s8 = scalar_lea.vmem [#allocation7], %s764_s21  ;;  %s770_s24 = sshll.u32 %s1052_s18, 7 }
  0x43   : > { %326 = vmatpush1.msra.mxu0 %v305_v2  ;;  %v294_v9 = vld [vmem:[#allocation5 + $0x110] sm:$0xff]  ;;  %v293_v10 = vld [vmem:[#allocation5 + $0x108] sm:$0xff]  ;;  %v291_v11 = vld [vmem:[#allocation5 + $0xf8] sm:$0xff]  ;;  %917 = vset.pattern.permute.xlu0 %v1068_v36  ;;  %s257_s23 = scalar_select %p256_p1, %s1052_s18, 1  ;;  %v538_v2 = vand.u32 127, %v310_v34 }
  0x44   : > { %327 = vmatprep.subr.mxu0 %v303_v3  ;;  %v290_v12 = vld [vmem:[#allocation5 + $0xf0] sm:$0xff]  ;;  %v288_v13 = vld [vmem:[#allocation5 + $0xe0] sm:$0xff]  ;;  %v287_v14 = vld [vmem:[#allocation5 + $0xd8] sm:$0xff]  ;;  %v544_v37 = vadd.s32 1, %v1238_v35  ;;  %v316_v40 = vsub.s32 1, %v1238_v35  ;;  %v312_v42 = vsub.s32 0, %v1238_v35  ;;  %s1288_s11 = scalar_lea.hbm %s1338_s4, %s770_s24 }
  0x45   : > { %328 = vmatpush1.msra.mxu0 %v302_v4  ;;  %v285_v15 = vld [vmem:[#allocation5 + $0xc8] sm:$0xff]  ;;  %v284_v16 = vld [vmem:[#allocation5 + $0xc0] sm:$0xff]  ;;  %v282_v17 = vld [vmem:[#allocation5 + $0xb0] sm:$0xff]  ;;  %s258_s30 = scalar_lea.vmem %s1337_s3, %s257_s23  ;;  %s657_s9 = sshll.u32 %s255_s8, 4  ;;  %s1283_s9 = int_to_ptr.vmem [resolvable:$true] %s657_s9 }
  0x46   : > { %329 = vmatprep.subr.mxu0 %v300_v5  ;;  %v281_v18 = vld [vmem:[#allocation5 + $0xa8] sm:$0xff]  ;;  %v279_v19 = vld [vmem:[#allocation5 + $0x98] sm:$0xff]  ;;  %v278_v20 = vld [vmem:[#allocation5 + $0x90] sm:$0xff]  ;;  %s643_s29 = scalar_lea.sflag [#allocation4], %s1210_s12  ;;  %s976_s22 = scalar_lea.vmem %s1283_s9, 128 }
  0x47   : > { %330 = vmatpush1.msra.mxu0 %v299_v6  ;;  %v276_v21 = vld [vmem:[#allocation5 + $0x80] sm:$0xff]  ;;  %v275_v22 = vld [vmem:[#allocation5 + $0x78] sm:$0xff]  ;;  %v273_v23 = vld [vmem:[#allocation5 + $0x68] sm:$0xff]  ;;  %p977_p8 = scmp.ne.s32.totalorder %s1283_s9, %s976_s22  ;;  %s1069_s18 = smov [#allocation7]  }
  0x48   : > { %331 = vmatprep.subr.mxu0 %v297_v7  ;;  %v272_v24 = vld [vmem:[#allocation5 + $0x60] sm:$0xff]  ;;  %v270_v25 = vld [vmem:[#allocation5 + $0x50] sm:$0xff]  ;;  %v269_v26 = vld [vmem:[#allocation5 + $0x48] sm:$0xff]  ;;  %s980_s21 = sshll.u32 %s1069_s18, 4  ;;  %s981_s21 = int_to_ptr.vmem [resolvable:$false] %s980_s21 }
  0x49   : > { %332 = vmatpush1.msra.mxu0 %v296_v8  ;;  %v267_v27 = vld [vmem:[#allocation5 + $0x38] sm:$0xff]  ;;  %v266_v28 = vld [vmem:[#allocation5 + $0x30] sm:$0xff]  ;;  %v264_v29 = vld [vmem:[#allocation5 + $0x20] sm:$0xff]  ;;  %p978_p10 = pnand %p977_p8, %p1182_p13  ;;  %p983_p2 = scmp.lt.s32.totalorder %s1283_s9, %s981_s21 }
  0x4a   : > { %333 = vmatprep.subr.mxu0 %v294_v9  ;;  %v263_v30 = vld [vmem:[#allocation5 + $0x18] sm:$0xff]  ;;  %v261_v31 = vld [vmem:[#allocation5 + $0x8] sm:$0xff]  ;;  %v260_v32 = vld [vmem:[#allocation5] sm:$0xff] }
  0x4b   : > { %334 = vmatpush1.msra.mxu0 %v293_v10  ;;  %v1229_v33 = vld [vmem:[%s1216_s1] sm:$0xff]  ;;  %v304_v50 = vld [vmem:[#allocation5 + $0x160] sm:$0xff]  ;;  %v301_v51 = vld [vmem:[#allocation5 + $0x148] sm:$0xff]  ;;  %p979_p0 = pneg %p978_p10  ;;  %s982_s1 = scalar_lea.vmem %s981_s21, 256 }
  0x4c   : > { %335 = vmatprep.subr.mxu0 %v291_v11  ;;  %v767_v38 = vld [vmem:[%s258_s30] ss:$0 sm:$0xff]  ;;  %v307_v49 = vld [vmem:[#allocation5 + $0x178] sm:$0xff]  ;;  %v292_v54 = vld [vmem:[#allocation5 + $0x100] sm:$0xff]  ;;  %p984_p3 = scmp.lt.s32.totalorder %s982_s1, %s976_s22 }
  0x4d   : > { %336 = vmatpush1.msra.mxu0 %v290_v12  ;;  %vm549_vm1 = vcmp.lt.s32.totalorder %v544_v37, %v767_v38  ;;  %v1250_v41 = vld [vmem:[%s1336_s2] sm:$0x7]  ;;  %795 = vmatpush3.msra.mxu1 %v307_v49  ;;  %v295_v53 = vld [vmem:[#allocation5 + $0x118] sm:$0xff]  ;;  %v289_v55 = vld [vmem:[#allocation5 + $0xe8] sm:$0xff]  ;;  %v320_v12 = vsub.s32 2, %v1238_v35 }
  0x4e   : > { %337 = vmatprep.subr.mxu0 %v288_v13  ;;  %v550_v39 = vsel %vm549_vm1, %v544_v37, %v767_v38  ;;  %v317_v43 = vrot.slane %v1250_v41, %v316_v40  ;;  %v313_v45 = vrot.slane %v1250_v41, %v312_v42  ;;  %796 = vmatprep.subr.mxu1 %v1066_v0  ;;  %v298_v52 = vld [vmem:[#allocation5 + $0x130] sm:$0xff]  ;;  %v283_v57 = vld [vmem:[#allocation5 + $0xb8] sm:$0xff]  ;;  %v280_v58 = vld [vmem:[#allocation5 + $0xa0] sm:$0xff]  ;;  %p985_p5 = por %p984_p3, %p983_p2 }
  0x4f   : > { %338 = vmatpush1.msra.mxu0 %v287_v14  ;;  %552 = vperm.xlu0 %917, %v550_v39   ;;  %v286_v56 = vld [vmem:[#allocation5 + $0xd0] sm:$0xff]  ;;  %v277_v59 = vld [vmem:[#allocation5 + $0x88] sm:$0xff]  ;;  %v271_v61 = vld [vmem:[#allocation5 + $0x58] sm:$0xff]  ;;  %v321_v14 = vrot.slane %v1250_v41, %v320_v12 }
  0x50   : > { %339 = vmatprep.subr.mxu0 %v285_v15  ;;  %797 = vmatpush3.msra.mxu1 %v304_v50  ;;  %v274_v60 = vld [vmem:[#allocation5 + $0x70] sm:$0xff]  ;;  %v268_v62 = vld [vmem:[#allocation5 + $0x40] sm:$0xff]  ;;  %v265_v63 = vld [vmem:[#allocation5 + $0x28] sm:$0xff]  ;;  %p986_p7 = pnand %p985_p5, %p979_p0 }
  0x51   : > { %340 = vmatpush1.msra.mxu0 %v284_v16  ;;  %798 = vmatprep.subr.mxu1 %v1066_v0  ;;  %v262_v1 = vld [vmem:[#allocation5 + $0x10] sm:$0xff] }
  0x52   : > { %341 = vmatprep.subr.mxu0 %v282_v17  ;;  %799 = vmatpush3.msra.mxu1 %v301_v51 }
  0x53   : > { %342 = vmatpush1.msra.mxu0 %v281_v18  ;;  %800 = vmatprep.subr.mxu1 %v1066_v0 }
  0x54   : > { %343 = vmatprep.subr.mxu0 %v279_v19  ;;  %801 = vmatpush3.msra.mxu1 %v298_v52 }
  0x55   : > { %344 = vmatpush1.msra.mxu0 %v278_v20  ;;  %802 = vmatprep.subr.mxu1 %v1066_v0 }
  0x56   : > { %345 = vmatprep.subr.mxu0 %v276_v21  ;;  %803 = vmatpush3.msra.mxu1 %v295_v53 }
  0x57   : > { %346 = vmatpush1.msra.mxu0 %v275_v22  ;;  %804 = vmatprep.subr.mxu1 %v1066_v0 }
  0x58   : > { %347 = vmatprep.subr.mxu0 %v273_v23  ;;  %805 = vmatpush3.msra.mxu1 %v292_v54 }
  0x59   : > { %348 = vmatpush1.msra.mxu0 %v272_v24  ;;  %806 = vmatprep.subr.mxu1 %v1066_v0 }
  0x5a   : > { %349 = vmatprep.subr.mxu0 %v270_v25  ;;  %807 = vmatpush3.msra.mxu1 %v289_v55 }
  0x5b   : > { %350 = vmatpush1.msra.mxu0 %v269_v26  ;;  %808 = vmatprep.subr.mxu1 %v1066_v0 }
  0x5c   : > { %351 = vmatprep.subr.mxu0 %v267_v27  ;;  %809 = vmatpush3.msra.mxu1 %v286_v56 }
  0x5d   : > { %352 = vmatpush1.msra.mxu0 %v266_v28  ;;  %810 = vmatprep.subr.mxu1 %v1066_v0 }
  0x5e   : > { %353 = vmatprep.subr.mxu0 %v264_v29  ;;  %811 = vmatpush3.msra.mxu1 %v283_v57 }
  0x5f   : > { %354 = vmatpush1.msra.mxu0 %v263_v30  ;;  %812 = vmatprep.subr.mxu1 %v1066_v0 }
  0x60   : > { %355 = vmatprep.subr.mxu0 %v261_v31  ;;  %813 = vmatpush3.msra.mxu1 %v280_v58 }
  0x61   : > { %356 = vmatpush1.msra.mxu0 %v260_v32  ;;  %814 = vmatprep.subr.mxu1 %v1066_v0 }
  0x62   : > { %390 = vmatmul.mubr.f32.vlgmr.msra.gmra.mxu0 %v1229_v33  ;;  %829 = vmatprep.subr.mxu0 %v1066_v0 }
  0x63   : > { %831 = vmatprep.mubr.msk.f32.mxu0 %vm1067_vm0, %v1066_v0  ;;  %815 = vmatpush3.msra.mxu1 %v277_v59 }
  0x64   : > { %816 = vmatprep.subr.mxu1 %v1066_v0 }
  0x65   : > { %817 = vmatpush3.msra.mxu1 %v274_v60 }
  0x66   : > { %818 = vmatprep.subr.mxu1 %v1066_v0 }
  0x67   : > { %819 = vmatpush3.msra.mxu1 %v271_v61 }
  0x68   : > { %820 = vmatprep.subr.mxu1 %v1066_v0 }
  0x69   : > { %821 = vmatpush3.msra.mxu1 %v268_v62 }
  0x6a   : > { %822 = vmatprep.subr.mxu1 %v1066_v0 }
  0x6b   : > { %823 = vmatpush3.msra.mxu1 %v265_v63 }
  0x6c   : > { %824 = vmatprep.subr.mxu1 %v1066_v0 }
  0x6d   : > { %825 = vmatpush3.msra.mxu1 %v262_v1 }
  0x6e   : > { %827 = vmatmul.mubr.f32.vlgmr.msra.gmra.mxu1 %v1229_v33  ;;  %834 = vmatprep.subr.mxu1 %v1066_v0 }
  0x6f   : > { %836 = vmatprep.mubr.msk.f32.mxu1 %vm1067_vm0, %v1066_v0 }
  0xca   : > { %v553_v3 = vpop.permute.xlu0 %552 }
  0xcb   : > { %vm554_vm2 = vcmp.lt.s32.totalorder %v538_v2, %v553_v3 }
 0x122   : > { %v391_v44 = vpop.f32.mrf.mxu0 }
 0x123   : > { %v392_v48 = vadd.f32 %v391_v44, %v313_v45 }
 0x124   : > { %v393_v46 = vpop.f32.mrf.mxu0 }
 0x125   : > { %v394_v47 = vadd.f32 %v393_v46, %v317_v43 }
 0x127   : > { %830 = vmatpush3.xpose.msra.mxu0 %v394_v47 }
 0x12a   : > { %832 = vmatmul.mubr.f32.vlgmr.msra.gmra.mxu0 %v392_v48 }
 0x12e   : > { %v462_v13 = vpop.f32.mrf.mxu1 }
 0x12f   : > { %v463_v16 = vadd.f32 %v462_v13, %v321_v14 }
 0x130   : > { %v828_v15 = vpop.f32.mrf.mxu1 }
 0x131   : > { %835 = vmatpush3.msra.mxu1 %v463_v16 }
 0x1ea   : > { %v532_v4 = vpop.f32.mrf.mxu0 }
 0x1eb   : > { %v555_v5 = vsel %vm554_vm2, %v532_v4, -1e+30 }
 0x1ec   : > { %v833_v6 = vpop.f32.mrf.mxu0  ;;  %v557_v7 = vsel %vm556_vm3, %v555_v5, -inf }
 0x1ed   : > { %558 = vmax.xlane.f32.xlu0 %v557_v7 }
 0x276   : > { %v559_v8 = vpop.xlane.xlu0 %558 }
 0x277   : > { %v560_v9 = vsub.f32 %v555_v5, %v559_v8 }
 0x279   : > { %v561_v10 = vmul.f32 1.442695, %v560_v9 }
 0x27b   : > { %918 = vpow2.f32 %v561_v10 }
 0x288   : > { %v919_v11 = vpop.eup %918 }
 0x289   : > { %v563_v0 = vsel %vm556_vm3, %v919_v11, 0.0 }
 0x28a   : > { %564 = vadd.xlane.f32.xlu1 %v563_v0 }
 0x313   : > { %v565_v17 = vpop.xlane.xlu1 %564 }
 0x314   : > { %920 = vrcp.f32 %v565_v17 }
 0x321   : > { %v921_v18 = vpop.eup %920 }
 0x322   : > { %v567_v19 = vmul.f32 %v921_v18, %v919_v11 }
 0x324   : > { %837 = vmatmul.mubr.msk.f32.vlgmr.msra.gmra.mxu1 %vm556_vm3, %v567_v19 }
 0x3e4   : > { %v637_v20 = vpop.f32.mrf.mxu1 }
 0x3e5   : > { %641 = vst [vmem:[%s255_s8] sm:$0xff] %v637_v20 }
 0x3e6   : > { %v838_v21 = vpop.f32.mrf.mxu1 }
 0x3e7   : > { %989 = shalt.err (!%p986_p7)
}
 0x3e8   : > { %s990_s23 = scalar_lea.hbm %s1288_s11, 128  ;;  %s994_s27 = scalar_lea.hbm %s1338_s4, 256 }
 0x3e9   : > { %p991_p6 = scmp.ne.s32.totalorder %s1288_s11, %s990_s23  ;;  %p995_p11 = scmp.lt.s32.totalorder %s1288_s11, %s1338_s4 }
 0x3ea   : > { %p996_p12 = scmp.lt.s32.totalorder %s994_s27, %s990_s23 }
 0x3eb   : > { %p992_p4 = pnand %p991_p6, %p1182_p13 }
 0x3ec   : > { %p997_p1 = por %p996_p12, %p995_p11 }
 0x3ed   : > { %p993_p9 = pneg %p992_p4 }
 0x3ef   : > { %p998_p8 = pnand %p997_p1, %p993_p9 }
 0x3f1   : > { %1001 = shalt.err (!%p998_p8)
}
 0x3f2   : > { %845 = dma.vmem_to_hbm [thread:$0]  (%p1182_p13), %s1283_s9, 128, %s1288_s11, %s643_s29  }
 0x3f3 PF: > { %s669_s7 = sand.u32 1, %s1040_s15   ;;  %p1352_p10 = scmp.ne.s32.totalorder %s1344_s26, 0 }
 0x3f4   : > { %p1353_p0 = scmp.ge.s32.totalorder %s1060_s20, 2  ;;  %s670_s8 = scalar_lea.sflag [#allocation4], %s669_s7 }
 0x3f6   : > { %p856_p2 = pnand %p1353_p0, %p1352_p10 }
 0x3f8   : > { %p857_p3 = pneg %p856_p2 }
 0x3fa   : > { %1035 = dma.done.wait (%p857_p3), %s670_s8, 128  }
 0x3fb   : > { %1037 = vsyncadd (%p857_p3), %s670_s8, 4294967168  ;;  %s21_s20 = sadd.s32 1, %s1060_s20   ;;  %s1354_s15 = smov %s1044_s16 }
 0x3fc   : > { %p18_p5 = scmp.ge.s32.totalorder %s21_s20, 4   ;;  %s1355_s16 = smov %s1048_s17 }
 0x3fd   : > { %s1356_s17 = smov %s1191_s28  ;;  %s1357_s18 = smov %s1056_s19 }
 0x3fe   : > { %s1358_s19 = smov %s1360_s5  ;;  %20 = sbr.rel (!%p18_p5) target bundleno = 9 (0x9), region = 88 }
 0x403   :  { %675 = vsyncpa [#allocation3], 1 }
 0x404   :  { %677 = vsyncpa [#allocation3 + $0x1], 1 }
 0x405   :  { %678 = vsyncpa [#allocation6], 1 }
 0x406   :  { %679 = vsyncpa [#allocation4], 1 }
 0x407   :  { %681 = vsyncpa [#allocation4 + $0x1], 1 }

</bundles_post_ra>
